<compile_context>
chip_gen: v7x
topology: tpu7x:2x2x1
jax: 0.10.0
libtpu: 0.0.40
codegen_flags: <defaults>
</compile_context>

<pallas_src>
import jax
import jax.numpy as jnp
from jax.experimental import pallas as pl
from jax.experimental.pallas import tpu as pltpu


def _st_attention_kernel(x_ref, w_ref, bs_ref, wt_ref, bt_ref, o_ref,
                         slab_ref, tbuf_ref):
    # x_ref    : (Bblk, C, T, XY) VMEM  lane-dense input block
    # w_ref    : (2*XY, XY)       VMEM  dense 7x7-conv matrix [sum ; max],
    #                                   zero padding + 1/C of the mean baked in
    # bs_ref   : (1,) SMEM  Conv2d bias
    # wt_ref   : (3,) SMEM  Conv1d(1->1, k=3) weights
    # bt_ref   : (1,) SMEM  Conv1d bias
    # o_ref    : (Bblk*T, XY) VMEM
    # slab_ref : (Bblk*T, 2*XY) VMEM  [channel-sum | channel-max] slab
    # tbuf_ref : (Bblk*T + 16, XY) VMEM  temporal halo buffer
    Bblk, C, T, XY = x_ref.shape
    rows = Bblk * T

    # ---- hoisted SMEM scalar reads (one sld each per grid step) ------------
    bs0 = bs_ref[0]
    wt0, wt1, wt2 = wt_ref[0], wt_ref[1], wt_ref[2]
    bt0 = bt_ref[0]

    # ---- channel reduction over the whole block (x is read exactly once) ---
    # Note: for very large C this unrolled loop could become a pipelined
    # C-chunk grid axis; unnecessary at these sizes.
    xc = x_ref[:, 0, :, :]
    s_sum = xc
    s_max = xc
    for c in range(1, C):
        xc = x_ref[:, c, :, :]
        s_sum = s_sum + xc
        s_max = jnp.maximum(s_max, xc)

    # Flatten (Bblk, T) -> rows through the slab scratch with static-slice
    # stores (avoids a value reshape) and build the [sum | max] concatenation
    # the dense conv matrix expects.  Lane offsets 0 / XY are 128-aligned.
    for b in range(Bblk):
        slab_ref[b * T:(b + 1) * T, :XY] = s_sum[b]
        slab_ref[b * T:(b + 1) * T, XY:] = s_max[b]

    # ---- 7x7 spatial conv as ONE MXU matmul (padding baked into w_ref) -----
    conv = jnp.dot(slab_ref[...], w_ref[...],
                   preferred_element_type=jnp.float32) + bs0
    s = jax.nn.sigmoid(conv)                                   # (rows, XY)

    # ---- temporal k=3 conv along T (zero padded per batch element) ---------
    # One aligned slab store + two shifted loads; only the two halo rows that
    # are actually read get zeroed.  The iota masks implement the zero padding
    # at t==0 / t==T-1 and also kill the cross-batch rows of the flat slab.
    tbuf_ref[7:8, :] = jnp.zeros((1, XY), jnp.float32)
    tbuf_ref[8 + rows:9 + rows, :] = jnp.zeros((1, XY), jnp.float32)
    tbuf_ref[8:8 + rows, :] = s
    t_idx = jax.lax.broadcasted_iota(jnp.int32, (rows, 1), 0) % T
    prev = jnp.where(t_idx > 0, tbuf_ref[7:7 + rows, :], 0.0)
    nxt = jnp.where(t_idx < T - 1, tbuf_ref[9:9 + rows, :], 0.0)
    res = wt0 * prev + wt1 * s + wt2 * nxt + bt0
    o_ref[...] = jax.nn.sigmoid(res)


def _build_spatial_matrix(ws, C, X, Y):
    """Dense (2*XY, XY) matrix encoding Conv2d(2->1, k=7, pad=3) on the flat
    X*Y plane.  Rows [0, XY) act on the channel-sum (1/C of the mean folded
    in), rows [XY, 2*XY) act on the channel-max; zero padding is baked in."""
    XY = X * Y
    idx = jnp.arange(XY, dtype=jnp.int32)
    gx, gy = idx // Y, idx % Y
    dx = gx[:, None] - gx[None, :] + 3          # (in, out): ix - ox + 3
    dy = gy[:, None] - gy[None, :] + 3
    valid = (dx >= 0) & (dx < 7) & (dy >= 0) & (dy < 7)
    tap = jnp.where(valid, dx * 7 + dy, 0)
    w_avg = (ws[0, 0].astype(jnp.float32) / C).reshape(-1)     # (49,)
    w_max = ws[0, 1].astype(jnp.float32).reshape(-1)
    w_sum_mat = jnp.where(valid, w_avg[tap], 0.0)              # (XY, XY)
    w_max_mat = jnp.where(valid, w_max[tap], 0.0)
    return jnp.concatenate([w_sum_mat, w_max_mat], axis=0)     # (2*XY, XY)


def _vmem_capacity_bytes():
    try:
        cap = getattr(pltpu.get_tpu_info(), "vmem_capacity_bytes", None)
        if cap:
            return int(cap)
    except Exception:
        pass
    return 64 << 20   # conservative fallback: v7x per-core VMEM


def _pick_block_batch(B, C, T, XY, budget_bytes, min_steps):
    """Largest divisor of B whose double-buffered in+out block fits the VMEM
    budget, preferring >= min_steps grid steps.  When T is not sublane-aligned
    only the full-B block keeps the flattened output block shape legal."""
    bytes_per_b = 2 * (C + 1) * T * XY * 4
    cap = max(1, budget_bytes // max(bytes_per_b, 1))
    candidates = [d for d in range(1, B + 1)
                  if B % d == 0 and d <= cap and ((d * T) % 8 == 0 or d == B)]
    if not candidates:
        return B
    preferred = [d for d in candidates if B // d >= min_steps]
    return max(preferred) if preferred else max(candidates)


def spatiotemporal_attention(x, ws, bs, wt, bt):
    """x: (B, C, T, X, Y) f32.  ws: (1,2,7,7), bs: (1,), wt: (1,1,3), bt: (1,)."""
    B, C, T, X, Y = x.shape
    XY = X * Y

    # Lane-dense relayout (row-major (X, Y) -> X*Y): free reshape, no HBM pad.
    x_flat = x.astype(jnp.float32).reshape(B, C, T, XY)
    w_spatial = _build_spatial_matrix(ws, C, X, Y)             # (2*XY, XY)
    wt_flat = wt.astype(jnp.float32).reshape(-1)               # (3,)
    bs_flat = bs.astype(jnp.float32).reshape(-1)               # (1,)
    bt_flat = bt.astype(jnp.float32).reshape(-1)               # (1,)

    # Generation-aware block sizing: v7x has ~64 MiB VMEM/core and 2 cores
    # (keep >=2 "parallel" grid steps); v5e/v6e have 128 MiB and 1 core
    # (single big block, no per-step overhead).
    vmem_cap = _vmem_capacity_bytes()
    min_steps = 2 if vmem_cap <= (64 << 20) else 1
    budget = max(4 << 20, vmem_cap // 3)
    Bblk = _pick_block_batch(B, C, T, XY, budget, min_steps)
    rows = Bblk * T
    grid = (B // Bblk,)

    block_bytes = 2 * (Bblk * C * T * XY + rows * XY) * 4      # dbl-buffered in+out
    weight_bytes = 2 * (2 * XY) * XY * 4 * 2                   # dbl-buffered weights
    scratch_bytes = (rows * 2 * XY + (rows + 16) * XY) * 4
    vmem_limit = min(int(vmem_cap * 3 // 4),
                     max(16 << 20,
                         block_bytes + weight_bytes + scratch_bytes + (8 << 20)))

    cost = pl.CostEstimate(
        flops=2 * B * T * (2 * XY) * XY + 2 * B * C * T * XY + 6 * B * T * XY,
        transcendentals=2 * B * T * XY,
        bytes_accessed=4 * (B * C * T * XY + B * T * XY + 2 * XY * XY),
    )

    smem_spec = pl.BlockSpec(memory_space=pltpu.MemorySpace.SMEM)

    out_flat = pl.pallas_call(
        _st_attention_kernel,
        out_shape=jax.ShapeDtypeStruct((B * T, XY), jnp.float32),
        grid=grid,
        in_specs=[
            pl.BlockSpec((Bblk, C, T, XY), lambda b: (b, 0, 0, 0)),
            pl.BlockSpec((2 * XY, XY), lambda b: (0, 0)),
            smem_spec,   # bs
            smem_spec,   # wt
            smem_spec,   # bt
        ],
        out_specs=pl.BlockSpec((rows, XY), lambda b: (b, 0)),
        scratch_shapes=[
            pltpu.VMEM((rows, 2 * XY), jnp.float32),      # [sum | max] slab
            pltpu.VMEM((rows + 16, XY), jnp.float32),     # temporal halo buffer
        ],
        compiler_params=pltpu.CompilerParams(
            dimension_semantics=("parallel",),
            vmem_limit_bytes=vmem_limit,
        ),
        cost_estimate=cost,
    )(x_flat, w_spatial, bs_flat, wt_flat, bt_flat)

    return out_flat.reshape(B, 1, T, X, Y)


def _reference(x, ws, bs, wt, bt):
    """Pure-JAX transcription of the PyTorch forward, for correctness check."""
    B, C, T, X, Y = x.shape
    avg = jnp.mean(x, axis=1, keepdims=True)
    mx = jnp.max(x, axis=1, keepdims=True)
    out = jnp.concatenate([avg, mx], axis=1)                       # (B,2,T,X,Y)
    out = out.transpose(0, 2, 1, 3, 4).reshape(B * T, 2, X, Y)
    out = jax.lax.conv_general_dilated(
        out, ws, (1, 1), ((3, 3), (3, 3)),
        dimension_numbers=('NCHW', 'OIHW', 'NCHW')) + bs.reshape(1, 1, 1, 1)
    out = jax.nn.sigmoid(out)
    out = out.reshape(B, T, 1, X, Y)
    out = out.transpose(0, 3, 4, 2, 1).reshape(B * X * Y, 1, T)
    out = jax.lax.conv_general_dilated(
        out, wt, (1,), ((1, 1),),
        dimension_numbers=('NCH', 'OIH', 'NCH')) + bt.reshape(1, 1, 1)
    out = jax.nn.sigmoid(out)
    out = out.reshape(B, X, Y, 1, T).transpose(0, 3, 4, 1, 2)
    return out


if __name__ == "__main__":
    # The PyTorch forward only type-checks with in_channels=2 (spatial conv
    # consumes cat([avg, max])); the input's own channel dim C can be anything.
    B, C, T, X, Y = 2, 4, 8, 16, 16

    key = jax.random.PRNGKey(0)
    kx_, kws, kbs, kwt, kbt = jax.random.split(key, 5)
    x = jax.random.normal(kx_, (B, C, T, X, Y), jnp.float32)
    ws = jax.random.normal(kws, (1, 2, 7, 7), jnp.float32) * 0.1   # Conv2d(2,1,7) weight
    bs = jax.random.normal(kbs, (1,), jnp.float32) * 0.1           # Conv2d bias
    wt = jax.random.normal(kwt, (1, 1, 3), jnp.float32) * 0.1      # Conv1d(1,1,3) weight
    bt = jax.random.normal(kbt, (1,), jnp.float32) * 0.1           # Conv1d bias

    out = jax.jit(spatiotemporal_attention)(x, ws, bs, wt, bt)
    out = jax.block_until_ready(out)

    ref = _reference(x, ws, bs, wt, bt)
    assert out.shape == (B, 1, T, X, Y), out.shape
    max_err = float(jnp.max(jnp.abs(out - ref)))
    # The spatial conv now runs on the MXU; depending on generation the f32
    # contraction may be emulated with bf16 passes, so the bound is slightly
    # wider than pure-VPU f32 while still catching structural errors (>=1e-2).
    assert max_err < 2e-4, f"mismatch vs reference: {max_err}"

    print("KERNEL_OK")
</pallas_src>

<mosaic_0001>
module attributes {stable_mosaic.version = 11 : i64} {
  func.func @_st_attention_kernel(%arg0: i32, %arg1: memref<1x4x8x256xf32, #tpu.memory_space<vmem>>, %arg2: memref<512x256xf32, #tpu.memory_space<vmem>>, %arg3: memref<1xf32, #tpu.memory_space<smem>>, %arg4: memref<3xf32, #tpu.memory_space<smem>>, %arg5: memref<1xf32, #tpu.memory_space<smem>>, %arg6: memref<8x256xf32, #tpu.memory_space<vmem>>, %arg7: memref<8x512xf32, #tpu.memory_space<vmem>>, %arg8: memref<24x256xf32, #tpu.memory_space<vmem>>) attributes {dimension_semantics = [#tpu.dimension_semantics<parallel>], iteration_bounds = array<i64: 2>, scalar_prefetch = 0 : i64, scratch_operands = 2 : i64, tpu.core_type = #tpu.core_type<tc>, window_params = [{transform_indices = @transform_0, window_bounds = array<i64: 1, 4, 8, 256>}, {pipeline_mode = #tpu.pipeline_mode<synchronous>, transform_indices = @transform_1, window_bounds = array<i64: 512, 256>}, {transform_indices = @transform_2, window_bounds = array<i64: 1>}, {transform_indices = @transform_3, window_bounds = array<i64: 3>}, {transform_indices = @transform_4, window_bounds = array<i64: 1>}, {transform_indices = @transform_5, window_bounds = array<i64: 8, 256>}]} {
    %c0 = arith.constant 0 : index
    %0 = memref.load %arg3[%c0] : memref<1xf32, #tpu.memory_space<smem>>
    %c0_0 = arith.constant 0 : index
    %1 = memref.load %arg4[%c0_0] : memref<3xf32, #tpu.memory_space<smem>>
    %c1 = arith.constant 1 : index
    %2 = memref.load %arg4[%c1] : memref<3xf32, #tpu.memory_space<smem>>
    %c2 = arith.constant 2 : index
    %3 = memref.load %arg4[%c2] : memref<3xf32, #tpu.memory_space<smem>>
    %c0_1 = arith.constant 0 : index
    %4 = memref.load %arg5[%c0_1] : memref<1xf32, #tpu.memory_space<smem>>
    %c0_2 = arith.constant 0 : index
    %c0_3 = arith.constant 0 : index
    %c0_4 = arith.constant 0 : index
    %c0_5 = arith.constant 0 : index
    %5 = vector.load %arg1[%c0_2, %c0_3, %c0_4, %c0_5] : memref<1x4x8x256xf32, #tpu.memory_space<vmem>>, vector<1x1x8x256xf32>
    %6 = vector.shape_cast %5 : vector<1x1x8x256xf32> to vector<1x8x256xf32>
    %c0_6 = arith.constant 0 : index
    %c1_7 = arith.constant 1 : index
    %c0_8 = arith.constant 0 : index
    %c0_9 = arith.constant 0 : index
    %7 = vector.load %arg1[%c0_6, %c1_7, %c0_8, %c0_9] : memref<1x4x8x256xf32, #tpu.memory_space<vmem>>, vector<1x1x8x256xf32>
    %8 = vector.shape_cast %7 : vector<1x1x8x256xf32> to vector<1x8x256xf32>
    %9 = arith.addf %6, %8 : vector<1x8x256xf32>
    %10 = arith.maximumf %6, %8 : vector<1x8x256xf32>
    %c0_10 = arith.constant 0 : index
    %c2_11 = arith.constant 2 : index
    %c0_12 = arith.constant 0 : index
    %c0_13 = arith.constant 0 : index
    %11 = vector.load %arg1[%c0_10, %c2_11, %c0_12, %c0_13] : memref<1x4x8x256xf32, #tpu.memory_space<vmem>>, vector<1x1x8x256xf32>
    %12 = vector.shape_cast %11 : vector<1x1x8x256xf32> to vector<1x8x256xf32>
    %13 = arith.addf %9, %12 : vector<1x8x256xf32>
    %14 = arith.maximumf %10, %12 : vector<1x8x256xf32>
    %c0_14 = arith.constant 0 : index
    %c3 = arith.constant 3 : index
    %c0_15 = arith.constant 0 : index
    %c0_16 = arith.constant 0 : index
    %15 = vector.load %arg1[%c0_14, %c3, %c0_15, %c0_16] : memref<1x4x8x256xf32, #tpu.memory_space<vmem>>, vector<1x1x8x256xf32>
    %16 = vector.shape_cast %15 : vector<1x1x8x256xf32> to vector<1x8x256xf32>
    %17 = arith.addf %13, %16 : vector<1x8x256xf32>
    %18 = arith.maximumf %14, %16 : vector<1x8x256xf32>
    %19 = vector.shape_cast %17 : vector<1x8x256xf32> to vector<8x256xf32>
    %c0_17 = arith.constant 0 : index
    %c0_18 = arith.constant 0 : index
    %20 = vector.load %arg7[%c0_17, %c0_18] : memref<8x512xf32, #tpu.memory_space<vmem>>, vector<8x256xf32>
    tpu.vector_store %arg7[%c0_17, %c0_18], %19 {strides = array<i32>} : memref<8x512xf32, #tpu.memory_space<vmem>>, vector<8x256xf32>,
    %21 = vector.shape_cast %18 : vector<1x8x256xf32> to vector<8x256xf32>
    %c0_19 = arith.constant 0 : index
    %c256 = arith.constant 256 : index
    %22 = vector.load %arg7[%c0_19, %c256] : memref<8x512xf32, #tpu.memory_space<vmem>>, vector<8x256xf32>
    tpu.vector_store %arg7[%c0_19, %c256], %21 {strides = array<i32>} : memref<8x512xf32, #tpu.memory_space<vmem>>, vector<8x256xf32>,
    %c0_20 = arith.constant 0 : index
    %c0_21 = arith.constant 0 : index
    %23 = vector.load %arg7[%c0_20, %c0_21] : memref<8x512xf32, #tpu.memory_space<vmem>>, vector<8x512xf32>
    %c0_22 = arith.constant 0 : index
    %c0_23 = arith.constant 0 : index
    %24 = vector.load %arg2[%c0_22, %c0_23] : memref<512x256xf32, #tpu.memory_space<vmem>>, vector<512x256xf32>
    %cst = arith.constant dense<0.000000e+00> : vector<8x256xf32>
    %25 = tpu.matmul %23, %24, %cst {dimension_numbers = #tpu.dot_dimension_numbers<[1], [0], [0], [1], [0, 0, 1, 1], [], []>} : vector<8x512xf32>, vector<512x256xf32>, vector<8x256xf32> -> vector<8x256xf32>
    %26 = vector.broadcast %0 : f32 to vector<8x256xf32>
    %27 = arith.addf %25, %26 : vector<8x256xf32>
    %28 = arith.negf %27 : vector<8x256xf32>
    %29 = math.exp %28 : vector<8x256xf32>
    %cst_24 = arith.constant 1.000000e+00 : f32
    %30 = vector.broadcast %cst_24 : f32 to vector<8x256xf32>
    %31 = arith.addf %30, %29 : vector<8x256xf32>
    %32 = arith.divf %30, %31 : vector<8x256xf32>
    %cst_25 = arith.constant 0.000000e+00 : f32
    %33 = vector.broadcast %cst_25 : f32 to vector<1x256xf32>
    %c7 = arith.constant 7 : index
    %c0_26 = arith.constant 0 : index
    %34 = vector.load %arg8[%c7, %c0_26] : memref<24x256xf32, #tpu.memory_space<vmem>>, vector<1x256xf32>
    tpu.vector_store %arg8[%c7, %c0_26], %33 {strides = array<i32>} : memref<24x256xf32, #tpu.memory_space<vmem>>, vector<1x256xf32>,
    %cst_27 = arith.constant 0.000000e+00 : f32
    %35 = vector.broadcast %cst_27 : f32 to vector<1x256xf32>
    %c16 = arith.constant 16 : index
    %c0_28 = arith.constant 0 : index
    %36 = vector.load %arg8[%c16, %c0_28] : memref<24x256xf32, #tpu.memory_space<vmem>>, vector<1x256xf32>
    tpu.vector_store %arg8[%c16, %c0_28], %35 {strides = array<i32>} : memref<24x256xf32, #tpu.memory_space<vmem>>, vector<1x256xf32>,
    %c8 = arith.constant 8 : index
    %c0_29 = arith.constant 0 : index
    %37 = vector.load %arg8[%c8, %c0_29] : memref<24x256xf32, #tpu.memory_space<vmem>>, vector<8x256xf32>
    tpu.vector_store %arg8[%c8, %c0_29], %32 {strides = array<i32>} : memref<24x256xf32, #tpu.memory_space<vmem>>, vector<8x256xf32>,
    %38 = tpu.iota {dimensions = array<i32: 0>} : vector<8x1xi32>
    %c8_i32 = arith.constant 8 : i32
    %c0_i32 = arith.constant 0 : i32
    %39 = arith.cmpi eq, %c8_i32, %c0_i32 : i32
    %c1_i32 = arith.constant 1 : i32
    %40 = arith.select %39, %c1_i32, %c8_i32 : i32
    %41 = vector.broadcast %40 : i32 to vector<8x1xi32>
    %42 = arith.remsi %38, %41 : vector<8x1xi32>
    %c0_i32_30 = arith.constant 0 : i32
    %43 = vector.broadcast %c0_i32_30 : i32 to vector<8x1xi32>
    %44 = arith.cmpi ne, %42, %43 : vector<8x1xi32>
    %c0_i32_31 = arith.constant 0 : i32
    %45 = vector.broadcast %c0_i32_31 : i32 to vector<8x1xi32>
    %46 = arith.cmpi slt, %42, %45 : vector<8x1xi32>
    %c0_i32_32 = arith.constant 0 : i32
    %47 = arith.cmpi slt, %40, %c0_i32_32 : i32
    %48 = vector.broadcast %47 : i1 to vector<8x1xi1>
    %49 = vector.broadcast %48 : vector<8x1xi1> to vector<8x1xi1>
    %50 = arith.xori %46, %49 : vector<8x1xi1>
    %51 = arith.andi %50, %44 : vector<8x1xi1>
    %52 = vector.broadcast %40 : i32 to vector<8x1xi32>
    %53 = arith.addi %42, %52 : vector<8x1xi32>
    %54 = arith.select %51, %53, %42 : vector<8x1xi1>, vector<8x1xi32>
    %c0_i32_33 = arith.constant 0 : i32
    %55 = vector.broadcast %c0_i32_33 : i32 to vector<8x1xi32>
    %56 = arith.cmpi sgt, %54, %55 : vector<8x1xi32>
    %c7_34 = arith.constant 7 : index
    %c0_35 = arith.constant 0 : index
    %57 = vector.load %arg8[%c7_34, %c0_35] : memref<24x256xf32, #tpu.memory_space<vmem>>, vector<8x256xf32>
    %cst_36 = arith.constant 0.000000e+00 : f32
    %58 = vector.shape_cast %56 : vector<8x1xi1> to vector<8x1xi1>
    %59 = vector.broadcast %58 : vector<8x1xi1> to vector<8x256xi1>
    %60 = vector.broadcast %cst_36 : f32 to vector<8x256xf32>
    %61 = arith.select %59, %57, %60 : vector<8x256xi1>, vector<8x256xf32>
    %c7_i32 = arith.constant 7 : i32
    %62 = vector.broadcast %c7_i32 : i32 to vector<8x1xi32>
    %63 = arith.cmpi slt, %54, %62 : vector<8x1xi32>
    %c9 = arith.constant 9 : index
    %c0_37 = arith.constant 0 : index
    %64 = vector.load %arg8[%c9, %c0_37] : memref<24x256xf32, #tpu.memory_space<vmem>>, vector<8x256xf32>
    %cst_38 = arith.constant 0.000000e+00 : f32
    %65 = vector.shape_cast %63 : vector<8x1xi1> to vector<8x1xi1>
    %66 = vector.broadcast %65 : vector<8x1xi1> to vector<8x256xi1>
    %67 = vector.broadcast %cst_38 : f32 to vector<8x256xf32>
    %68 = arith.select %66, %64, %67 : vector<8x256xi1>, vector<8x256xf32>
    %69 = vector.broadcast %1 : f32 to vector<8x256xf32>
    %70 = arith.mulf %69, %61 : vector<8x256xf32>
    %71 = vector.broadcast %2 : f32 to vector<8x256xf32>
    %72 = arith.mulf %71, %32 : vector<8x256xf32>
    %73 = arith.addf %70, %72 : vector<8x256xf32>
    %74 = vector.broadcast %3 : f32 to vector<8x256xf32>
    %75 = arith.mulf %74, %68 : vector<8x256xf32>
    %76 = arith.addf %73, %75 : vector<8x256xf32>
    %77 = vector.broadcast %4 : f32 to vector<8x256xf32>
    %78 = arith.addf %76, %77 : vector<8x256xf32>
    %79 = arith.negf %78 : vector<8x256xf32>
    %80 = math.exp %79 : vector<8x256xf32>
    %cst_39 = arith.constant 1.000000e+00 : f32
    %81 = vector.broadcast %cst_39 : f32 to vector<8x256xf32>
    %82 = arith.addf %81, %80 : vector<8x256xf32>
    %83 = arith.divf %81, %82 : vector<8x256xf32>
    %c0_40 = arith.constant 0 : index
    %c0_41 = arith.constant 0 : index
    %84 = vector.load %arg6[%c0_40, %c0_41] : memref<8x256xf32, #tpu.memory_space<vmem>>, vector<8x256xf32>
    tpu.vector_store %arg6[%c0_40, %c0_41], %83 {strides = array<i32>} : memref<8x256xf32, #tpu.memory_space<vmem>>, vector<8x256xf32>,
    return
  }
  func.func @transform_0(%arg0: i32) -> (i32, i32, i32, i32) {
    %c0_i32 = arith.constant 0 : i32
    %c0_i32_0 = arith.constant 0 : i32
    %c0_i32_1 = arith.constant 0 : i32
    %c0_i32_2 = arith.constant 0 : i32
    return %arg0, %c0_i32, %c0_i32_0, %c0_i32_1 : i32, i32, i32, i32
  }
  func.func @transform_1(%arg0: i32) -> (i32, i32) {
    %c0_i32 = arith.constant 0 : i32
    %c0_i32_0 = arith.constant 0 : i32
    %c0_i32_1 = arith.constant 0 : i32
    return %c0_i32, %c0_i32_0 : i32, i32
  }
  func.func @transform_2(%arg0: i32) -> i32 {
    %c0_i32 = arith.constant 0 : i32
    %c0_i32_0 = arith.constant 0 : i32
    return %c0_i32 : i32
  }
  func.func @transform_3(%arg0: i32) -> i32 {
    %c0_i32 = arith.constant 0 : i32
    %c0_i32_0 = arith.constant 0 : i32
    return %c0_i32 : i32
  }
  func.func @transform_4(%arg0: i32) -> i32 {
    %c0_i32 = arith.constant 0 : i32
    %c0_i32_0 = arith.constant 0 : i32
    return %c0_i32 : i32
  }
  func.func @transform_5(%arg0: i32) -> (i32, i32) {
    %c0_i32 = arith.constant 0 : i32
    %c0_i32_0 = arith.constant 0 : i32
    return %arg0, %c0_i32 : i32, i32
  }
}

</mosaic_0001>

<bundles_post_ra>
// kernel: spatiotemporal_attention.1
= control target key start
LH: loop header
LB: loop body
LE: loop exit
PB: predicated region body
PF: predicated region fallthrough
CT: control target
= control target key end

     0   :  { %s1458_s0 = inlined_call_operand.vmem [shape: f32[2,4,8,256], index: 0, kind: input, shape index: {}]   ;;  %s1459_s1 = inlined_call_operand.vmem [shape: f32[512,256], index: 1, kind: input, shape index: {}]   ;;  %s1460_s2 = inlined_call_operand.<no memory space> [shape: f32[1], index: 2, kind: input, shape index: {}]   ;;  %s1461_s3 = inlined_call_operand.vmem [shape: f32[3], index: 3, kind: input, shape index: {}]   ;;  %s1462_s4 = inlined_call_operand.<no memory space> [shape: f32[1], index: 4, kind: input, shape index: {}]   ;;  %s1463_s5 = inlined_call_operand.vmem [shape: f32[16,256], index: 5, kind: output, shape index: {}]  }
   0x1   :  { %10 = sst [smem:[#allocation4]] %s1460_s2 }
   0x2   :  { %11 = sst [smem:[#allocation5]] %s1462_s4 }
   0x3   :  { %12 = vsyncpa [#allocation7], 0  ;;  %s987_s22 = smov 0  }
   0x4 LB: > { %s993_s23 = sadd.s32 4294967295, %s947_s22   ;;  %p729_p0 = scmp.ge.s32.totalorder %s947_s22, 1  ;;  %s947_s22 = sphi %s987_s22, %s18_s22  }
   0x5   : > { %p159_p1 = scmp.lt.s32.totalorder %s947_s22, 3  ;;  %s178_s4 = sshll.u32 %s1461_s3, 4  ;;  %s179_s4 = int_to_ptr.vmem [resolvable:$true] %s178_s4 }
   0x6   : > { %p894_p3 = scmp.eq.s32.totalorder %s993_s23, 0  ;;  %s922_s26 = scalar_lea.vmem %s179_s4, 16 }
   0x7   : > { %p1000_p2 = pnand %p729_p0, %p159_p1  ;;  %p923_p6 = scmp.ne.s32.totalorder %s179_s4, %s922_s26 }
   0x8   : > { %p930_p10 = scmp.lt.s32.totalorder %s179_s4, %s179_s4  ;;  %p931_p11 = scmp.lt.s32.totalorder %s922_s26, %s922_s26 }
   0x9   : > { %p890_p4 = pneg %p1000_p2 }
   0xa   : > { %p932_p12 = por %p931_p11, %p930_p10 }
   0xb   : > { %p891_p5 = pnand %p894_p3, %p890_p4 }
   0xd   : > { %p924_p7 = pneg %p891_p5 }
   0xf   : > { %p925_p8 = pnand %p924_p7, %p923_p6 }
  0x11   : > { %p926_p9 = pneg %p925_p8 }
  0x13   : > { %p933_p13 = pnand %p932_p12, %p926_p9 }
  0x15   : > { %936 = shalt.err (!%p933_p13)
}
  0x16   : > { %s949_s27 = smov [#allocation6]   ;;  %202 = sbr.rel (%p1000_p2) target bundleno = 389 (0x185), region = 40 }
  0x17   : > { %893 = dma.vmem_to_smem (!%p891_p5), %s179_s4, 16, %s949_s27, [#allocation7]  }
  0x1d   : > { %942 = dma.done.wait (%p894_p3), [#allocation7], 16  }
  0x1e   : > { %944 = vsyncadd (%p894_p3), [#allocation7], 4294967280 }
  0x1f   : > { %208 = sfence }
  0x20   : > { %v278_v0 = vld [vmem:[%s1459_s1 + $0x8] sm:$0xff]  ;;  %v280_v1 = vld [vmem:[%s1459_s1 + $0x18] sm:$0xff]  ;;  %v277_v2 = vld [vmem:[%s1459_s1] sm:$0xff]  ;;  %p231_p0 = scmp.lt.s32.totalorder %s993_s23, 1  ;;  %s241_s16 = sld [smem:[#allocation4]]  ;;  %vm597_vm2 = vcmask 1040384  }
  0x21   : > { %v754_v3 = vpack.c.bf16 %v280_v1, %v278_v0  ;;  %v279_v4 = vld [vmem:[%s1459_s1 + $0x10] sm:$0xff]  ;;  %v342_v5 = vld [vmem:[%s1459_s1 + $0x208] sm:$0xff]  ;;  %v344_v6 = vld [vmem:[%s1459_s1 + $0x218] sm:$0xff]  ;;  %s1421_s17 = sld [smem:[#allocation6 + $0x1]]  ;;  %s1423_s18 = sld [smem:[#allocation6 + $0x2]]  ;;  %vm619_vm3 = vcmask 1046528  }
  0x22   : > { %v756_v7 = vpack.c.bf16 %v279_v4, %v277_v2  ;;  %v818_v8 = vpack.c.bf16 %v344_v6, %v342_v5  ;;  %v341_v9 = vld [vmem:[%s1459_s1 + $0x200] sm:$0xff]  ;;  %v343_v10 = vld [vmem:[%s1459_s1 + $0x210] sm:$0xff]  ;;  %v282_v11 = vld [vmem:[%s1459_s1 + $0x28] sm:$0xff]  ;;  %s1470_s23 = smov (!%p231_p0, %s993_s23), 1  ;;  %s1429_s19 = sld [smem:[#allocation5]] }
  0x23   : > { %755 = vmatprep.subr.bf16.mxu1 %v754_v3  ;;  %v820_v12 = vpack.c.bf16 %v343_v10, %v341_v9  ;;  %v284_v13 = vld [vmem:[%s1459_s1 + $0x38] sm:$0xff]  ;;  %v281_v14 = vld [vmem:[%s1459_s1 + $0x20] sm:$0xff]  ;;  %v283_v15 = vld [vmem:[%s1459_s1 + $0x30] sm:$0xff]  ;;  %s752_s21 = sshll.u32 %s1470_s23, 6  ;;  %s753_s20 = sshll.u32 %s1470_s23, 4 }
  0x24   : > { %757 = vmatpush1.bf16.msra.mxu1 %v756_v7  ;;  %819 = vmatprep.subr.bf16.mxu0 %v818_v8  ;;  %v758_v16 = vpack.c.bf16 %v284_v13, %v282_v11  ;;  %v760_v17 = vpack.c.bf16 %v283_v15, %v281_v14  ;;  %v346_v18 = vld [vmem:[%s1459_s1 + $0x228] sm:$0xff]  ;;  %v348_v19 = vld [vmem:[%s1459_s1 + $0x238] sm:$0xff]  ;;  %v345_v20 = vld [vmem:[%s1459_s1 + $0x220] sm:$0xff]  ;;  %s1301_s15 = scalar_lea.vmem %s1458_s0, %s752_s21  ;;  %s240_s24 = scalar_lea.vmem %s1463_s5, %s753_s20 }
  0x25   : > { %821 = vmatpush1.bf16.msra.mxu0 %v820_v12  ;;  %v822_v21 = vpack.c.bf16 %v348_v19, %v346_v18  ;;  %v347_v22 = vld [vmem:[%s1459_s1 + $0x230] sm:$0xff]  ;;  %v286_v23 = vld [vmem:[%s1459_s1 + $0x48] sm:$0xff]  ;;  %v288_v24 = vld [vmem:[%s1459_s1 + $0x58] sm:$0xff] }
  0x26   : > { %759 = vmatprep.subr.bf16.mxu1 %v758_v16  ;;  %v824_v25 = vpack.c.bf16 %v347_v22, %v345_v20  ;;  %v762_v26 = vpack.c.bf16 %v288_v24, %v286_v23  ;;  %v285_v27 = vld [vmem:[%s1459_s1 + $0x40] sm:$0xff]  ;;  %v287_v28 = vld [vmem:[%s1459_s1 + $0x50] sm:$0xff]  ;;  %v350_v29 = vld [vmem:[%s1459_s1 + $0x248] sm:$0xff] }
  0x27   : > { %823 = vmatprep.subr.bf16.mxu0 %v822_v21  ;;  %v352_v30 = vld [vmem:[%s1459_s1 + $0x258] sm:$0xff]  ;;  %v349_v31 = vld [vmem:[%s1459_s1 + $0x240] sm:$0xff]  ;;  %v351_v32 = vld [vmem:[%s1459_s1 + $0x250] sm:$0xff]  ;;  %v764_v33 = vpack.c.bf16 %v287_v28, %v285_v27 }
  0x28   : > { %761 = vmatpush1.bf16.msra.mxu1 %v760_v17  ;;  %v826_v34 = vpack.c.bf16 %v352_v30, %v350_v29  ;;  %v290_v35 = vld [vmem:[%s1459_s1 + $0x68] sm:$0xff]  ;;  %v292_v36 = vld [vmem:[%s1459_s1 + $0x78] sm:$0xff]  ;;  %v289_v37 = vld [vmem:[%s1459_s1 + $0x60] sm:$0xff]  ;;  %v828_v38 = vpack.c.bf16 %v351_v32, %v349_v31 }
  0x29   : > { %825 = vmatpush1.bf16.msra.mxu0 %v824_v25  ;;  %763 = vmatprep.subr.bf16.mxu1 %v762_v26  ;;  %v766_v39 = vpack.c.bf16 %v292_v36, %v290_v35  ;;  %v291_v40 = vld [vmem:[%s1459_s1 + $0x70] sm:$0xff]  ;;  %v354_v41 = vld [vmem:[%s1459_s1 + $0x268] sm:$0xff]  ;;  %v356_v42 = vld [vmem:[%s1459_s1 + $0x278] sm:$0xff] }
  0x2a   : > { %827 = vmatprep.subr.bf16.mxu0 %v826_v34  ;;  %v830_v43 = vpack.c.bf16 %v356_v42, %v354_v41  ;;  %v353_v44 = vld [vmem:[%s1459_s1 + $0x260] sm:$0xff]  ;;  %v355_v45 = vld [vmem:[%s1459_s1 + $0x270] sm:$0xff]  ;;  %v294_v46 = vld [vmem:[%s1459_s1 + $0x88] sm:$0xff]  ;;  %v768_v48 = vpack.c.bf16 %v291_v40, %v289_v37 }
  0x2b   : > { %v296_v47 = vld [vmem:[%s1459_s1 + $0x98] sm:$0xff]  ;;  %v358_v49 = vld [vmem:[%s1459_s1 + $0x288] sm:$0xff]  ;;  %v832_v51 = vpack.c.bf16 %v355_v45, %v353_v44  ;;  %v293_v53 = vld [vmem:[%s1459_s1 + $0x80] sm:$0xff] }
  0x2c   : > { %765 = vmatpush1.bf16.msra.mxu1 %v764_v33  ;;  %v360_v50 = vld [vmem:[%s1459_s1 + $0x298] sm:$0xff]  ;;  %v770_v52 = vpack.c.bf16 %v296_v47, %v294_v46  ;;  %v295_v54 = vld [vmem:[%s1459_s1 + $0x90] sm:$0xff]  ;;  %v357_v55 = vld [vmem:[%s1459_s1 + $0x280] sm:$0xff] }
  0x2d   : > { %829 = vmatpush1.bf16.msra.mxu0 %v828_v38  ;;  %767 = vmatprep.subr.bf16.mxu1 %v766_v39  ;;  %v834_v56 = vpack.c.bf16 %v360_v50, %v358_v49  ;;  %v359_v57 = vld [vmem:[%s1459_s1 + $0x290] sm:$0xff]  ;;  %v298_v58 = vld [vmem:[%s1459_s1 + $0xa8] sm:$0xff]  ;;  %v300_v59 = vld [vmem:[%s1459_s1 + $0xb8] sm:$0xff]  ;;  %v772_v62 = vpack.c.bf16 %v295_v54, %v293_v53 }
  0x2e   : > { %831 = vmatprep.subr.bf16.mxu0 %v830_v43  ;;  %v362_v60 = vld [vmem:[%s1459_s1 + $0x2a8] sm:$0xff]  ;;  %v364_v61 = vld [vmem:[%s1459_s1 + $0x2b8] sm:$0xff]  ;;  %v836_v63 = vpack.c.bf16 %v359_v57, %v357_v55  ;;  %v774_v0 = vpack.c.bf16 %v300_v59, %v298_v58  ;;  %v297_v1 = vld [vmem:[%s1459_s1 + $0xa0] sm:$0xff] }
  0x2f   : > { %v299_v2 = vld [vmem:[%s1459_s1 + $0xb0] sm:$0xff]  ;;  %v361_v3 = vld [vmem:[%s1459_s1 + $0x2a0] sm:$0xff]  ;;  %v838_v4 = vpack.c.bf16 %v364_v61, %v362_v60  ;;  %v302_v6 = vld [vmem:[%s1459_s1 + $0xc8] sm:$0xff] }
  0x30   : > { %769 = vmatpush1.bf16.msra.mxu1 %v768_v48  ;;  %v363_v5 = vld [vmem:[%s1459_s1 + $0x2b0] sm:$0xff]  ;;  %v304_v7 = vld [vmem:[%s1459_s1 + $0xd8] sm:$0xff]  ;;  %v366_v8 = vld [vmem:[%s1459_s1 + $0x2c8] sm:$0xff]  ;;  %v776_v10 = vpack.c.bf16 %v299_v2, %v297_v1 }
  0x31   : > { %833 = vmatpush1.bf16.msra.mxu0 %v832_v51  ;;  %771 = vmatprep.subr.bf16.mxu1 %v770_v52  ;;  %v368_v9 = vld [vmem:[%s1459_s1 + $0x2d8] sm:$0xff]  ;;  %v840_v11 = vpack.c.bf16 %v363_v5, %v361_v3  ;;  %v778_v12 = vpack.c.bf16 %v304_v7, %v302_v6  ;;  %v301_v13 = vld [vmem:[%s1459_s1 + $0xc0] sm:$0xff]  ;;  %v303_v14 = vld [vmem:[%s1459_s1 + $0xd0] sm:$0xff] }
  0x32   : > { %835 = vmatprep.subr.bf16.mxu0 %v834_v56  ;;  %v365_v15 = vld [vmem:[%s1459_s1 + $0x2c0] sm:$0xff]  ;;  %v842_v16 = vpack.c.bf16 %v368_v9, %v366_v8  ;;  %v367_v17 = vld [vmem:[%s1459_s1 + $0x2d0] sm:$0xff]  ;;  %v306_v18 = vld [vmem:[%s1459_s1 + $0xe8] sm:$0xff]  ;;  %v780_v22 = vpack.c.bf16 %v303_v14, %v301_v13 }
  0x33   : > { %v308_v19 = vld [vmem:[%s1459_s1 + $0xf8] sm:$0xff]  ;;  %v370_v20 = vld [vmem:[%s1459_s1 + $0x2e8] sm:$0xff]  ;;  %v844_v23 = vpack.c.bf16 %v367_v17, %v365_v15  ;;  %v305_v25 = vld [vmem:[%s1459_s1 + $0xe0] sm:$0xff] }
  0x34   : > { %773 = vmatpush1.bf16.msra.mxu1 %v772_v62  ;;  %v372_v21 = vld [vmem:[%s1459_s1 + $0x2f8] sm:$0xff]  ;;  %v782_v24 = vpack.c.bf16 %v308_v19, %v306_v18  ;;  %v307_v26 = vld [vmem:[%s1459_s1 + $0xf0] sm:$0xff]  ;;  %v369_v27 = vld [vmem:[%s1459_s1 + $0x2e0] sm:$0xff] }
  0x35   : > { %837 = vmatpush1.bf16.msra.mxu0 %v836_v63  ;;  %775 = vmatprep.subr.bf16.mxu1 %v774_v0  ;;  %v846_v28 = vpack.c.bf16 %v372_v21, %v370_v20  ;;  %v371_v29 = vld [vmem:[%s1459_s1 + $0x2f0] sm:$0xff]  ;;  %v310_v30 = vld [vmem:[%s1459_s1 + $0x108] sm:$0xff]  ;;  %v312_v31 = vld [vmem:[%s1459_s1 + $0x118] sm:$0xff]  ;;  %v784_v34 = vpack.c.bf16 %v307_v26, %v305_v25 }
  0x36   : > { %839 = vmatprep.subr.bf16.mxu0 %v838_v4  ;;  %v374_v32 = vld [vmem:[%s1459_s1 + $0x308] sm:$0xff]  ;;  %v376_v33 = vld [vmem:[%s1459_s1 + $0x318] sm:$0xff]  ;;  %v848_v35 = vpack.c.bf16 %v371_v29, %v369_v27  ;;  %v786_v36 = vpack.c.bf16 %v312_v31, %v310_v30  ;;  %v309_v37 = vld [vmem:[%s1459_s1 + $0x100] sm:$0xff] }
  0x37   : > { %v311_v38 = vld [vmem:[%s1459_s1 + $0x110] sm:$0xff]  ;;  %v373_v39 = vld [vmem:[%s1459_s1 + $0x300] sm:$0xff]  ;;  %v850_v40 = vpack.c.bf16 %v376_v33, %v374_v32  ;;  %v314_v42 = vld [vmem:[%s1459_s1 + $0x128] sm:$0xff] }
  0x38   : > { %777 = vmatpush1.bf16.msra.mxu1 %v776_v10  ;;  %v375_v41 = vld [vmem:[%s1459_s1 + $0x310] sm:$0xff]  ;;  %v316_v43 = vld [vmem:[%s1459_s1 + $0x138] sm:$0xff]  ;;  %v378_v44 = vld [vmem:[%s1459_s1 + $0x328] sm:$0xff]  ;;  %v788_v46 = vpack.c.bf16 %v311_v38, %v309_v37 }
  0x39   : > { %841 = vmatpush1.bf16.msra.mxu0 %v840_v11  ;;  %779 = vmatprep.subr.bf16.mxu1 %v778_v12  ;;  %v380_v45 = vld [vmem:[%s1459_s1 + $0x338] sm:$0xff]  ;;  %v852_v47 = vpack.c.bf16 %v375_v41, %v373_v39  ;;  %v790_v48 = vpack.c.bf16 %v316_v43, %v314_v42  ;;  %v313_v49 = vld [vmem:[%s1459_s1 + $0x120] sm:$0xff]  ;;  %v315_v50 = vld [vmem:[%s1459_s1 + $0x130] sm:$0xff] }
  0x3a   : > { %843 = vmatprep.subr.bf16.mxu0 %v842_v16  ;;  %v377_v51 = vld [vmem:[%s1459_s1 + $0x320] sm:$0xff]  ;;  %v854_v52 = vpack.c.bf16 %v380_v45, %v378_v44  ;;  %v379_v53 = vld [vmem:[%s1459_s1 + $0x330] sm:$0xff]  ;;  %v318_v54 = vld [vmem:[%s1459_s1 + $0x148] sm:$0xff]  ;;  %v792_v58 = vpack.c.bf16 %v315_v50, %v313_v49 }
  0x3b   : > { %v320_v55 = vld [vmem:[%s1459_s1 + $0x158] sm:$0xff]  ;;  %v382_v56 = vld [vmem:[%s1459_s1 + $0x348] sm:$0xff]  ;;  %v856_v59 = vpack.c.bf16 %v379_v53, %v377_v51  ;;  %v317_v61 = vld [vmem:[%s1459_s1 + $0x140] sm:$0xff] }
  0x3c   : > { %781 = vmatpush1.bf16.msra.mxu1 %v780_v22  ;;  %v384_v57 = vld [vmem:[%s1459_s1 + $0x358] sm:$0xff]  ;;  %v794_v60 = vpack.c.bf16 %v320_v55, %v318_v54  ;;  %v319_v62 = vld [vmem:[%s1459_s1 + $0x150] sm:$0xff]  ;;  %v381_v63 = vld [vmem:[%s1459_s1 + $0x340] sm:$0xff] }
  0x3d   : > { %845 = vmatpush1.bf16.msra.mxu0 %v844_v23  ;;  %783 = vmatprep.subr.bf16.mxu1 %v782_v24  ;;  %v858_v0 = vpack.c.bf16 %v384_v57, %v382_v56  ;;  %v383_v1 = vld [vmem:[%s1459_s1 + $0x350] sm:$0xff]  ;;  %v322_v2 = vld [vmem:[%s1459_s1 + $0x168] sm:$0xff]  ;;  %v324_v3 = vld [vmem:[%s1459_s1 + $0x178] sm:$0xff]  ;;  %v796_v6 = vpack.c.bf16 %v319_v62, %v317_v61 }
  0x3e   : > { %847 = vmatprep.subr.bf16.mxu0 %v846_v28  ;;  %v386_v4 = vld [vmem:[%s1459_s1 + $0x368] sm:$0xff]  ;;  %v388_v5 = vld [vmem:[%s1459_s1 + $0x378] sm:$0xff]  ;;  %v321_v7 = vld [vmem:[%s1459_s1 + $0x160] sm:$0xff]  ;;  %v860_v9 = vpack.c.bf16 %v383_v1, %v381_v63  ;;  %v798_v10 = vpack.c.bf16 %v324_v3, %v322_v2 }
  0x3f   : > { %v323_v8 = vld [vmem:[%s1459_s1 + $0x170] sm:$0xff]  ;;  %v385_v11 = vld [vmem:[%s1459_s1 + $0x360] sm:$0xff]  ;;  %v326_v13 = vld [vmem:[%s1459_s1 + $0x188] sm:$0xff]  ;;  %v862_v14 = vpack.c.bf16 %v388_v5, %v386_v4 }
  0x40   : > { %785 = vmatpush1.bf16.msra.mxu1 %v784_v34  ;;  %v387_v12 = vld [vmem:[%s1459_s1 + $0x370] sm:$0xff]  ;;  %v328_v15 = vld [vmem:[%s1459_s1 + $0x198] sm:$0xff]  ;;  %v390_v16 = vld [vmem:[%s1459_s1 + $0x388] sm:$0xff]  ;;  %v800_v21 = vpack.c.bf16 %v323_v8, %v321_v7 }
  0x41   : > { %849 = vmatpush1.bf16.msra.mxu0 %v848_v35  ;;  %787 = vmatprep.subr.bf16.mxu1 %v786_v36  ;;  %v247_v17 = vld [vmem:[%s1301_s15 + $0x8] sm:$0xff]  ;;  %v392_v18 = vld [vmem:[%s1459_s1 + $0x398] sm:$0xff]  ;;  %v325_v22 = vld [vmem:[%s1459_s1 + $0x180] sm:$0xff]  ;;  %v864_v25 = vpack.c.bf16 %v387_v12, %v385_v11  ;;  %v802_v26 = vpack.c.bf16 %v328_v15, %v326_v13 }
  0x42   : > { %851 = vmatprep.subr.bf16.mxu0 %v850_v40  ;;  %v741_v19 = vld [vmem:[%s1301_s15 + $0x18] sm:$0xff]  ;;  %v743_v20 = vld [vmem:[%s1301_s15 + $0x28] sm:$0xff]  ;;  %v327_v27 = vld [vmem:[%s1459_s1 + $0x190] sm:$0xff]  ;;  %v866_v30 = vpack.c.bf16 %v392_v18, %v390_v16 }
  0x43   : > { %v252_v23 = vadd.f32 %v741_v19, %v247_v17  ;;  %v254_v24 = vmax.f32 %v247_v17, %v741_v19  ;;  %v389_v28 = vld [vmem:[%s1459_s1 + $0x380] sm:$0xff]  ;;  %v745_v29 = vld [vmem:[%s1301_s15 + $0x38] sm:$0xff]  ;;  %v391_v31 = vld [vmem:[%s1459_s1 + $0x390] sm:$0xff]  ;;  %v804_v38 = vpack.c.bf16 %v327_v27, %v325_v22  ;;  %v405_v22 = vstv %s241_s16 }
  0x44   : > { %789 = vmatpush1.bf16.msra.mxu1 %v788_v46  ;;  %v330_v32 = vld [vmem:[%s1459_s1 + $0x1a8] sm:$0xff]  ;;  %v332_v33 = vld [vmem:[%s1459_s1 + $0x1b8] sm:$0xff]  ;;  %v868_v41 = vpack.c.bf16 %v391_v31, %v389_v28  ;;  %v329_v43 = vld [vmem:[%s1459_s1 + $0x1a0] sm:$0xff] }
  0x45   : > { %853 = vmatpush1.bf16.msra.mxu0 %v852_v47  ;;  %791 = vmatprep.subr.bf16.mxu1 %v790_v48  ;;  %v259_v34 = vadd.f32 %v743_v20, %v252_v23  ;;  %v261_v35 = vmax.f32 %v254_v24, %v743_v20  ;;  %v394_v36 = vld [vmem:[%s1459_s1 + $0x3a8] sm:$0xff]  ;;  %v396_v37 = vld [vmem:[%s1459_s1 + $0x3b8] sm:$0xff]  ;;  %v806_v42 = vpack.c.bf16 %v332_v33, %v330_v32  ;;  %v331_v44 = vld [vmem:[%s1459_s1 + $0x1b0] sm:$0xff]  ;;  %v560_v20 = vlaneseq }
  0x46   : > { %855 = vmatprep.subr.bf16.mxu0 %v854_v52  ;;  %v393_v45 = vld [vmem:[%s1459_s1 + $0x3a0] sm:$0xff]  ;;  %v870_v46 = vpack.c.bf16 %v396_v37, %v394_v36  ;;  %v395_v47 = vld [vmem:[%s1459_s1 + $0x3b0] sm:$0xff]  ;;  %v334_v48 = vld [vmem:[%s1459_s1 + $0x1c8] sm:$0xff]  ;;  %v808_v52 = vpack.c.bf16 %v331_v44, %v329_v43 }
  0x47   : > { %v266_v39 = vadd.f32 %v745_v29, %v259_v34  ;;  %v268_v40 = vmax.f32 %v261_v35, %v745_v29  ;;  %v336_v49 = vld [vmem:[%s1459_s1 + $0x1d8] sm:$0xff]  ;;  %v398_v50 = vld [vmem:[%s1459_s1 + $0x3c8] sm:$0xff]  ;;  %v246_v53 = vld [vmem:[%s1301_s15] sm:$0xff]  ;;  %v872_v55 = vpack.c.bf16 %v395_v47, %v393_v45  ;;  %vm562_vm0 = vcmp.lt.s32.totalorder %v560_v20, 256 }
  0x48   : > { %793 = vmatpush1.bf16.msra.mxu1 %v792_v58  ;;  %v400_v51 = vld [vmem:[%s1459_s1 + $0x3d8] sm:$0xff]  ;;  %v740_v54 = vld [vmem:[%s1301_s15 + $0x10] sm:$0xff]  ;;  %v810_v56 = vpack.c.bf16 %v336_v49, %v334_v48  ;;  %v333_v57 = vld [vmem:[%s1459_s1 + $0x1c0] sm:$0xff]  ;;  %v573_v37 = vshrl.u32 %v560_v20, 7 }
  0x49   : > { %857 = vmatpush1.bf16.msra.mxu0 %v856_v59  ;;  %795 = vmatprep.subr.bf16.mxu1 %v794_v60  ;;  %v335_v58 = vld [vmem:[%s1459_s1 + $0x1d0] sm:$0xff]  ;;  %v397_v59 = vld [vmem:[%s1459_s1 + $0x3c0] sm:$0xff]  ;;  %v874_v60 = vpack.c.bf16 %v400_v51, %v398_v50  ;;  %v338_v62 = vld [vmem:[%s1459_s1 + $0x1e8] sm:$0xff]  ;;  %v251_v2 = vadd.f32 %v740_v54, %v246_v53  ;;  %v253_v5 = vmax.f32 %v246_v53, %v740_v54 }
  0x4a   : > { %859 = vmatprep.subr.bf16.mxu0 %v858_v0  ;;  %470 = vmatprep.mubr.f32.mxu1 %v266_v39  ;;  %v399_v61 = vld [vmem:[%s1459_s1 + $0x3d0] sm:$0xff]  ;;  %v340_v63 = vld [vmem:[%s1459_s1 + $0x1f8] sm:$0xff]  ;;  %v402_v0 = vld [vmem:[%s1459_s1 + $0x3e8] sm:$0xff]  ;;  %v812_v3 = vpack.c.bf16 %v335_v58, %v333_v57  ;;  %v633_v58 = vstv %s1421_s17 }
  0x4b   : > { %541 = vmatprep.mubr.f32.mxu0 %v268_v40  ;;  %v404_v1 = vld [vmem:[%s1459_s1 + $0x3f8] sm:$0xff]  ;;  %v742_v4 = vld [vmem:[%s1301_s15 + $0x20] sm:$0xff]  ;;  %v814_v7 = vpack.c.bf16 %v340_v63, %v338_v62  ;;  %v403_v12 = vld [vmem:[%s1459_s1 + $0x3f0] sm:$0xff]  ;;  %v578_v40 = vand.u32 7, %v573_v37  ;;  %v638_v63 = vstv %s1423_s18 }
  0x4c   : > { %797 = vmatpush1.bf16.msra.mxu1 %v796_v6  ;;  %v876_v6 = vpack.c.bf16 %v399_v61, %v397_v59  ;;  %v337_v8 = vld [vmem:[%s1459_s1 + $0x1e0] sm:$0xff]  ;;  %v258_v13 = vadd.f32 %v742_v4, %v251_v2  ;;  %v744_v15 = vld [vmem:[%s1301_s15 + $0x30] sm:$0xff]  ;;  %v260_v16 = vmax.f32 %v253_v5, %v742_v4  ;;  %s1419_s15 = sld [smem:[#allocation6]] }
  0x4d   : > { %861 = vmatpush1.bf16.msra.mxu0 %v860_v9  ;;  %799 = vmatprep.subr.bf16.mxu1 %v798_v10  ;;  %v339_v9 = vld [vmem:[%s1459_s1 + $0x1f0] sm:$0xff]  ;;  %v878_v10 = vpack.c.bf16 %v404_v1, %v402_v0  ;;  %v401_v11 = vld [vmem:[%s1459_s1 + $0x3e0] sm:$0xff]  ;;  %vm1425_vm1 = vcmp.gt.s32.totalorder %v578_v40, 0  ;;  %vm1431_vm4 = vcmp.lt.s32.totalorder %v578_v40, 7 }
  0x4e   : > { %863 = vmatprep.subr.bf16.mxu0 %v862_v14  ;;  %v816_v14 = vpack.c.bf16 %v339_v9, %v337_v8  ;;  %v880_v17 = vpack.c.bf16 %v403_v12, %v401_v11  ;;  %v265_v18 = vadd.f32 %v744_v15, %v258_v13  ;;  %v267_v19 = vmax.f32 %v260_v16, %v744_v15 }
  0x4f   : > { %v643_v12 = vstv %s1429_s19 }
  0x50   : > { %801 = vmatpush1.bf16.msra.mxu1 %v800_v21  ;;  %v950_v21 = vmov 0.0  }
  0x51   : > { %865 = vmatpush1.bf16.msra.mxu0 %v864_v25  ;;  %803 = vmatprep.subr.bf16.mxu1 %v802_v26  ;;  %565 = vst.msk [vmem:[#allocation3 + $0x7] ss:$8 sm:$0x3] %vm562_vm0, %v950_v21  ;;  %568 = vst.msk [vmem:[#allocation3 + $0x20] ss:$8 sm:$0x3] %vm562_vm0, %v950_v21 }
  0x52   : > { %867 = vmatprep.subr.bf16.mxu0 %v866_v30  ;;  %v630_v57 = vstv %s1419_s15 }
  0x54   : > { %805 = vmatpush1.bf16.msra.mxu1 %v804_v38 }
  0x55   : > { %869 = vmatpush1.bf16.msra.mxu0 %v868_v41  ;;  %807 = vmatprep.subr.bf16.mxu1 %v806_v42 }
  0x56   : > { %871 = vmatprep.subr.bf16.mxu0 %v870_v46 }
  0x58   : > { %809 = vmatpush1.bf16.msra.mxu1 %v808_v52  ;;  %v587_v41 = vld [vmem:[#allocation3] sm:$0x80]  ;;  %v611_v42 = vld [vmem:[#allocation3 + $0x20] sm:$0x1]  ;;  %v588_v43 = vld [vmem:[#allocation3 + $0x8] sm:$0x80] }
  0x59   : > { %873 = vmatpush1.bf16.msra.mxu0 %v872_v55  ;;  %811 = vmatprep.subr.bf16.mxu1 %v810_v56  ;;  %v612_v44 = vld [vmem:[#allocation3 + $0x28] sm:$0x1]  ;;  %v598_v46 = vrot.slane %v587_v41, 7  ;;  %v621_v47 = vrot.slane %v611_v42, 1  ;;  %v601_v48 = vrot.slane %v588_v43, 7 }
  0x5a   : > { %875 = vmatprep.subr.bf16.mxu0 %v874_v60  ;;  %v624_v52 = vrot.slane %v612_v44, 1 }
  0x5c   : > { %813 = vmatpush1.bf16.msra.mxu1 %v812_v3 }
  0x5d   : > { %877 = vmatpush1.bf16.msra.mxu0 %v876_v6  ;;  %815 = vmatprep.subr.bf16.mxu1 %v814_v7 }
  0x5e   : > { %879 = vmatprep.subr.bf16.mxu0 %v878_v10 }
  0x60   : > { %817 = vmatpush1.bf16.msra.mxu1 %v816_v14 }
  0x61   : > { %881 = vmatpush1.bf16.msra.mxu0 %v880_v17 }
  0x63   : > { %471 = vmatmul.mubr.f32.vlgmr.msra.gmra.mrb[0].mxu1 %v265_v18 }
  0x64   : > { %542 = vmatmul.mubr.f32.vlgmr.msra.gmra.mrb[0].mxu0 %v267_v19 }
 0x136   : > { %v472_v23 = vpop.f32.mrb[0].mxu1 }
 0x137   : > { %v473_v24 = vadd.f32 %v472_v23, %v405_v22  ;;  %v474_v25 = vpop.f32.mrb[1].mxu1  ;;  %v543_v26 = vpop.f32.mrb[0].mxu0 }
 0x138   : > { %v475_v27 = vadd.f32 %v474_v25, %v405_v22  ;;  %v545_v28 = vpop.f32.mrb[1].mxu0 }
 0x139   : > { %v544_v29 = vadd.f32 %v543_v26, %v473_v24 }
 0x13a   : > { %v546_v30 = vadd.f32 %v545_v28, %v475_v27 }
 0x13b   : > { %v746_v31 = vmul.f32 -1.442695, %v544_v29 }
 0x13c   : > { %v747_v32 = vmul.f32 -1.442695, %v546_v30 }
 0x13d   : > { %906 = vpow2.f32 %v746_v31 }
 0x13e   : > { %908 = vpow2.f32 %v747_v32 }
 0x147   : > { %v907_v33 = vpop.eup %906 }
 0x148   : > { %v909_v34 = vpop.eup %908  ;;  %v554_v35 = vadd.f32 1.0, %v907_v33 }
 0x149   : > { %v555_v36 = vadd.f32 1.0, %v909_v34 }
 0x14a   : > { %910 = vrcp.f32 %v554_v35 }
 0x14b   : > { %912 = vrcp.f32 %v555_v36 }
 0x154   : > { %v911_v38 = vpop.eup %910 }
 0x155   : > { %v913_v39 = vpop.eup %912  ;;  %570 = vst [vmem:[#allocation3 + $0x10] sm:$0xff] %v911_v38  ;;  %v634_v5 = vmul.f32 %v911_v38, %v633_v58 }
 0x156   : > { %571 = vst [vmem:[#allocation3 + $0x18] sm:$0xff] %v913_v39  ;;  %v635_v9 = vmul.f32 %v913_v39, %v633_v58 }
 0x15c   : > { %v589_v49 = vld [vmem:[#allocation3 + $0x10] sm:$0x7f] }
 0x15d   : > { %v609_v51 = vld [vmem:[#allocation3 + $0x10] sm:$0xfe]  ;;  %v599_v53 = vrot.slane %v589_v49, 7  ;;  %v590_v55 = vld [vmem:[#allocation3 + $0x18] sm:$0x7f] }
 0x15e   : > { %v620_v54 = vrot.slane %v609_v51, 1  ;;  %v610_v56 = vld [vmem:[#allocation3 + $0x18] sm:$0xfe]  ;;  %v602_v59 = vrot.slane %v590_v55, 7 }
 0x15f   : > { %v623_v60 = vrot.slane %v610_v56, 1  ;;  %v600_v61 = vsel %vm597_vm2, %v598_v46, %v599_v53 }
 0x160   : > { %v622_v62 = vsel %vm619_vm3, %v620_v54, %v621_v47  ;;  %v606_v0 = vsel %vm1425_vm1, %v600_v61, 0.0  ;;  %v603_v2 = vsel %vm597_vm2, %v601_v48, %v602_v59 }
 0x161   : > { %v628_v1 = vsel %vm1431_vm4, %v622_v62, 0.0  ;;  %v625_v3 = vsel %vm619_vm3, %v623_v60, %v624_v52  ;;  %v631_v4 = vmul.f32 %v630_v57, %v606_v0  ;;  %v607_v6 = vsel %vm1425_vm1, %v603_v2, 0.0 }
 0x162   : > { %v629_v7 = vsel %vm1431_vm4, %v625_v3, 0.0  ;;  %v632_v8 = vmul.f32 %v630_v57, %v607_v6  ;;  %v639_v11 = vmul.f32 %v638_v63, %v628_v1 }
 0x163   : > { %v636_v10 = vadd.f32 %v634_v5, %v631_v4  ;;  %v640_v14 = vmul.f32 %v638_v63, %v629_v7 }
 0x164   : > { %v637_v13 = vadd.f32 %v635_v9, %v632_v8 }
 0x165   : > { %v641_v15 = vadd.f32 %v639_v11, %v636_v10 }
 0x166   : > { %v642_v16 = vadd.f32 %v640_v14, %v637_v13 }
 0x167   : > { %v644_v17 = vadd.f32 %v643_v12, %v641_v15 }
 0x168   : > { %v645_v18 = vadd.f32 %v643_v12, %v642_v16 }
 0x169   : > { %v748_v19 = vmul.f32 -1.442695, %v644_v17 }
 0x16a   : > { %v749_v20 = vmul.f32 -1.442695, %v645_v18 }
 0x16b   : > { %914 = vpow2.f32 %v748_v19 }
 0x16c   : > { %916 = vpow2.f32 %v749_v20 }
 0x175   : > { %v915_v21 = vpop.eup %914 }
 0x176   : > { %v917_v22 = vpop.eup %916  ;;  %v652_v23 = vadd.f32 1.0, %v915_v21 }
 0x177   : > { %v653_v24 = vadd.f32 1.0, %v917_v22 }
 0x178   : > { %918 = vrcp.f32 %v652_v23 }
 0x179   : > { %920 = vrcp.f32 %v653_v24 }
 0x182   : > { %v919_v25 = vpop.eup %918 }
 0x183   : > { %v921_v26 = vpop.eup %920  ;;  %658 = vst [vmem:[%s240_s24] sm:$0xff] %v919_v25 }
 0x184   : > { %659 = vst [vmem:[%s240_s24 + $0x8] sm:$0xff] %v921_v26 }
 0x185 PF: > { %s18_s22 = sadd.s32 1, %s947_s22  }
 0x186   : > { %p15_p1 = scmp.ge.s32.totalorder %s18_s22, 4  }
 0x188   :  { %17 = sbr.rel (!%p15_p1) target bundleno = 4 (0x4), region = 80 }
 0x18f   :  { %681 = vsyncpa [#allocation7], 1 }
 0x190   :  { %683 = vsyncpa [#allocation7 + $0x1], 1 }

</bundles_post_ra>
